<compile_context>
chip_gen: v6e
topology: v6e:2x2x1
jax: 0.10.0
libtpu: 0.0.40
codegen_flags: <defaults>
</compile_context>

<pallas_src>
import functools

import jax
import jax.numpy as jnp
from jax.experimental import pallas as pl
from jax.experimental.pallas import tpu as pltpu


def _ceil_div(a, b):
    return -(-a // b)


def _round_up(a, q):
    return _ceil_div(a, q) * q


def _tpu_budgets():
    """Returns (target bytes per input block, vmem_limit_bytes), generation aware."""
    vmem_cap = 128 * 1024 * 1024
    try:
        info = pltpu.get_tpu_info()
        for name in ("vmem_capacity_bytes", "vmem_bytes", "vmem_size_bytes"):
            cap = getattr(info, name, None)
            if cap:
                vmem_cap = int(cap)
                break
    except Exception:
        pass
    if vmem_cap <= 96 * 1024 * 1024:
        # v7x-class: 64 MiB VMEM per TensorCore -> smaller blocks, 32 MiB scoped.
        return 2 * 1024 * 1024, 32 * 1024 * 1024
    # v5e / v6e: 128 MiB VMEM -> ~4 MiB per input block, 64 MiB scoped limit.
    return 4 * 1024 * 1024, 64 * 1024 * 1024


def _pick_tile(total, max_tile, quantum):
    """Tile size along the blocked spatial axis.

    Returns (tile, num_tiles, has_tail).  `tile` is either == total or a
    multiple of `quantum` (TPU layout constraint).  Prefers exact divisors of
    `total` (within 2x of the budget) so the ragged-tail mask compiles away.
    """
    if total <= max_tile:
        return total, 1, False
    cap = max(quantum, (max_tile // quantum) * quantum)
    floor = max(quantum, (cap // 2 // quantum) * quantum)
    d = cap
    while d >= floor:
        if total % d == 0:
            return d, total // d, False
        d -= quantum
    return cap, _ceil_div(total, cap), True


def _kd_kernel(pred_ref, soft_ref, out_ref, *, inv_temp, minor_total, minor_tile,
               mask_tail, slab_reduce):
    # pred_ref / soft_ref: (1, C, T, 128) (main path) or (1, C, T) (fallback).
    # Channel / softmax axis (torch dim=1) is axis 1; axis 2 is the blocked
    # spatial axis.
    p = pred_ref[...].astype(jnp.float32) * inv_temp
    s = soft_ref[...].astype(jnp.float32) * inv_temp

    if mask_tail:
        # Ragged spatial tail: zero both logit blocks outside the valid range.
        # Identical (zero) logits give an exactly-zero per-location KL, so no
        # further masking of the result is needed.  The mask is (1,1,T[,1]) and
        # broadcasts over channels (cheap: no C-sized iota / selects).
        j = pl.program_id(1)
        idx_shape = tuple(p.shape[d] if d == 2 else 1 for d in range(p.ndim))
        idx = jax.lax.broadcasted_iota(jnp.int32, idx_shape, 2) + j * minor_tile
        valid = idx < minor_total
        p = jnp.where(valid, p, 0.0)
        s = jnp.where(valid, s, 0.0)

    # Channel-fused KL (softmax over axis 1):
    #   sum_c softmax(s)_c * (log_softmax(s)_c - log_softmax(p)_c)
    #     = inv_zs * sum_c es_c*(s_sh_c - p_sh_c) + (zs*inv_zs)*(log zp - log zs)
    # No per-element divide and no C-broadcast of the log-normalizers.  The
    # (zs*inv_zs) factor (== 1 up to the approx-reciprocal error) makes the
    # reciprocal error a pure relative error on the per-location KL instead of
    # being amplified by cancellation between the two terms.
    p_sh = p - jnp.max(p, axis=1, keepdims=True)
    s_sh = s - jnp.max(s, axis=1, keepdims=True)
    zp = jnp.sum(jnp.exp(p_sh), axis=1, keepdims=True)
    es = jnp.exp(s_sh)
    zs = jnp.sum(es, axis=1, keepdims=True)
    cross = jnp.sum(es * (s_sh - p_sh), axis=1, keepdims=True)
    inv_zs = pl.reciprocal(zs, approx=True)
    kl_loc = inv_zs * cross + (zs * inv_zs) * (jnp.log(zp) - jnp.log(zs))

    if slab_reduce:
        # Fold only the sublane (row) axis; emit a lane-dense (8,128) partial
        # sum slab (unmasked vst, no cross-lane XLU reduce).  Wrapper sums it.
        out_ref[...] = jnp.sum(kl_loc.reshape(-1, 8, 128), axis=0).reshape(out_ref.shape)
    else:
        # Small / odd tiles: single scalar partial, splatted lane-dense.
        out_ref[...] = jnp.broadcast_to(jnp.sum(kl_loc), out_ref.shape)


def criterion_kd(pred, soft, *, temperature=4, upsample=False):
    """Pallas equivalent of CriterionKD.forward (returns a scalar f32 loss)."""
    if upsample:
        # TODO(synk): F.interpolate(bilinear, align_corners=True) to (2h, 2w) has
        # no clean Pallas equivalent here; only upsample=False (the module
        # default) is supported.
        raise NotImplementedError("upsample=True path not implemented")

    n, c, h, w = pred.shape
    assert soft.shape == pred.shape
    hw = h * w
    numel = n * c * hw
    itemsize = jnp.dtype(pred.dtype).itemsize

    target_block_bytes, vmem_limit = _tpu_budgets()
    max_block_elems = max(1, target_block_bytes // itemsize)

    use_4d = (hw % 128 == 0)

    if use_4d:
        rows = hw // 128
        # TODO(synk): very large C (vocab-sized logits) would need a channel-tiled
        # online softmax to bound the C*8*128 minimum block; not implemented.
        max_rows = max(8, max_block_elems // (c * 128))
        tile, num_tiles, has_tail = _pick_tile(rows, max_rows, 8)
        # v7x megacore: guarantee >= 2 grid steps when the grid would collapse.
        if n * num_tiles < 2 and _round_up(_ceil_div(rows, 2), 8) < rows:
            tile = _round_up(_ceil_div(rows, 2), 8)
            num_tiles = _ceil_div(rows, tile)
            has_tail = (rows % tile) != 0
        x = pred.reshape(n, c, rows, 128)
        y = soft.reshape(n, c, rows, 128)
        in_block = (1, c, tile, 128)
        in_index = lambda i, j: (i, 0, j, 0)
        minor_total, minor_tile = rows, tile
        block_elems = c * tile * 128
        slab_reduce = (tile % 8 == 0)
    else:
        max_hw = max(128, (max_block_elems // c // 128) * 128)
        tile, num_tiles, has_tail = _pick_tile(hw, max_hw, 128)
        if n * num_tiles < 2 and _round_up(_ceil_div(hw, 2), 128) < hw:
            tile = _round_up(_ceil_div(hw, 2), 128)
            num_tiles = _ceil_div(hw, tile)
            has_tail = (hw % tile) != 0
        x = pred.reshape(n, c, hw)
        y = soft.reshape(n, c, hw)
        in_block = (1, c, tile)
        in_index = lambda i, j: (i, 0, j)
        minor_total, minor_tile = hw, tile
        block_elems = c * tile
        slab_reduce = False

    # Guard the scoped-VMEM limit when blocks are forced large (e.g. big C):
    # 2 inputs x 2 pipeline buffers (input dtype) + ~4 live f32 temporaries.
    est = 4 * block_elems * itemsize + 4 * block_elems * 4 + (2 << 20)
    vmem_limit = max(vmem_limit, est)

    kernel = functools.partial(
        _kd_kernel,
        inv_temp=1.0 / float(temperature),
        minor_total=minor_total,
        minor_tile=minor_tile,
        mask_tail=has_tail,
        slab_reduce=slab_reduce,
    )

    partials = pl.pallas_call(
        kernel,
        out_shape=jax.ShapeDtypeStruct((n, num_tiles, 8, 128), jnp.float32),
        grid_spec=pltpu.PrefetchScalarGridSpec(
            num_scalar_prefetch=0,
            grid=(n, num_tiles),
            in_specs=[
                pl.BlockSpec(in_block, in_index),
                pl.BlockSpec(in_block, in_index),
            ],
            out_specs=pl.BlockSpec((1, 1, 8, 128), lambda i, j: (i, j, 0, 0)),
        ),
        compiler_params=pltpu.CompilerParams(
            dimension_semantics=("parallel", "parallel"),
            vmem_limit_bytes=int(vmem_limit),
        ),
    )(x, y)

    # Tiny epilogue: sum per-block partials, apply T^2 / numel
    # (KLDivLoss(reduction='mean') divides by N*C*H*W).
    scale = float(temperature) * float(temperature) / float(numel)
    if slab_reduce:
        return jnp.sum(partials) * scale
    return jnp.sum(partials[:, :, 0, 0]) * scale


def _reference_kd(pred, soft, temperature=4):
    """Pure-JAX reference mirroring the PyTorch module."""
    p = pred / temperature
    s = soft / temperature
    log_q = jax.nn.log_softmax(p, axis=1)
    p_soft = jax.nn.softmax(s, axis=1)
    log_p_soft = jax.nn.log_softmax(s, axis=1)
    kl = p_soft * (log_p_soft - log_q)           # pointwise KLDivLoss term
    return jnp.mean(kl) * temperature * temperature


if __name__ == "__main__":
    key = jax.random.PRNGKey(0)
    k1, k2, k3, k4, k5, k6 = jax.random.split(key, 6)

    # 1) Main path: (2,4,16,16) f32, hw % 128 == 0 -> 4-D lane-dense layout.
    N, C, H, W = 2, 4, 16, 16
    pred = jax.random.normal(k1, (N, C, H, W), dtype=jnp.float32)
    soft = jax.random.normal(k2, (N, C, H, W), dtype=jnp.float32)
    loss = jax.block_until_ready(criterion_kd(pred, soft, temperature=4))
    ref = _reference_kd(pred, soft, temperature=4)
    assert jnp.allclose(loss, ref, rtol=2e-3, atol=1e-6), (loss, ref)

    # 2) Fallback path: hw not a multiple of 128, n=1 -> forced grid split for
    #    megacore balance, which also exercises the ragged-tail mask.
    pred2 = jax.random.normal(k3, (1, 19, 36, 36), dtype=jnp.float32)
    soft2 = jax.random.normal(k4, (1, 19, 36, 36), dtype=jnp.float32)
    loss2 = jax.block_until_ready(criterion_kd(pred2, soft2, temperature=4))
    ref2 = _reference_kd(pred2, soft2, temperature=4)
    assert jnp.allclose(loss2, ref2, rtol=2e-3, atol=1e-6), (loss2, ref2)

    # 3) 4-D path with row tiling + slab partial sums (n=1 forces a 2-way split).
    pred3 = jax.random.normal(k5, (1, 4, 32, 64), dtype=jnp.float32)
    soft3 = jax.random.normal(k6, (1, 4, 32, 64), dtype=jnp.float32)
    loss3 = jax.block_until_ready(criterion_kd(pred3, soft3, temperature=4))
    ref3 = _reference_kd(pred3, soft3, temperature=4)
    assert jnp.allclose(loss3, ref3, rtol=2e-3, atol=1e-6), (loss3, ref3)

    # 4) bf16 logits pass through; the in-kernel cast + dtype-aware tiling path.
    loss4 = jax.block_until_ready(
        criterion_kd(pred.astype(jnp.bfloat16), soft.astype(jnp.bfloat16), temperature=4))
    ref4 = _reference_kd(pred.astype(jnp.bfloat16).astype(jnp.float32),
                         soft.astype(jnp.bfloat16).astype(jnp.float32), temperature=4)
    assert jnp.allclose(loss4, ref4, rtol=2e-3, atol=1e-6), (loss4, ref4)

    print("KERNEL_OK")
</pallas_src>

<mosaic_0001>
module attributes {stable_mosaic.version = 11 : i64} {
  func.func @_kd_kernel(%arg0: i32, %arg1: i32, %arg2: memref<1x4x2x128xf32, #tpu.memory_space<vmem>>, %arg3: memref<1x4x2x128xf32, #tpu.memory_space<vmem>>, %arg4: memref<1x1x8x128xf32, #tpu.memory_space<vmem>>) attributes {dimension_semantics = [#tpu.dimension_semantics<parallel>, #tpu.dimension_semantics<parallel>], iteration_bounds = array<i64: 2, 1>, scalar_prefetch = 0 : i64, scratch_operands = 0 : i64, tpu.core_type = #tpu.core_type<tc>, window_params = [{transform_indices = @transform_0, window_bounds = array<i64: 1, 4, 2, 128>}, {transform_indices = @transform_1, window_bounds = array<i64: 1, 4, 2, 128>}, {transform_indices = @transform_2, window_bounds = array<i64: 1, 1, 8, 128>}]} {
    %c0 = arith.constant 0 : index
    %c0_0 = arith.constant 0 : index
    %c0_1 = arith.constant 0 : index
    %c0_2 = arith.constant 0 : index
    %0 = vector.load %arg2[%c0, %c0_0, %c0_1, %c0_2] : memref<1x4x2x128xf32, #tpu.memory_space<vmem>>, vector<1x4x2x128xf32>
    %cst = arith.constant 2.500000e-01 : f32
    %1 = vector.broadcast %cst : f32 to vector<1x4x2x128xf32>
    %2 = arith.mulf %0, %1 : vector<1x4x2x128xf32>
    %c0_3 = arith.constant 0 : index
    %c0_4 = arith.constant 0 : index
    %c0_5 = arith.constant 0 : index
    %c0_6 = arith.constant 0 : index
    %3 = vector.load %arg3[%c0_3, %c0_4, %c0_5, %c0_6] : memref<1x4x2x128xf32, #tpu.memory_space<vmem>>, vector<1x4x2x128xf32>
    %cst_7 = arith.constant 2.500000e-01 : f32
    %4 = vector.broadcast %cst_7 : f32 to vector<1x4x2x128xf32>
    %5 = arith.mulf %3, %4 : vector<1x4x2x128xf32>
    %cst_8 = arith.constant dense<0xFF800000> : vector<1x2x128xf32>
    %6 = vector.multi_reduction <maximumf>, %2, %cst_8 [1] : vector<1x4x2x128xf32> to vector<1x2x128xf32>
    %7 = vector.shape_cast %6 : vector<1x2x128xf32> to vector<1x1x2x128xf32>
    %8 = vector.broadcast %7 : vector<1x1x2x128xf32> to vector<1x4x2x128xf32>
    %9 = arith.subf %2, %8 : vector<1x4x2x128xf32>
    %cst_9 = arith.constant dense<0xFF800000> : vector<1x2x128xf32>
    %10 = vector.multi_reduction <maximumf>, %5, %cst_9 [1] : vector<1x4x2x128xf32> to vector<1x2x128xf32>
    %11 = vector.shape_cast %10 : vector<1x2x128xf32> to vector<1x1x2x128xf32>
    %12 = vector.broadcast %11 : vector<1x1x2x128xf32> to vector<1x4x2x128xf32>
    %13 = arith.subf %5, %12 : vector<1x4x2x128xf32>
    %14 = math.exp %9 : vector<1x4x2x128xf32>
    %cst_10 = arith.constant dense<0.000000e+00> : vector<1x2x128xf32>
    %15 = vector.multi_reduction <add>, %14, %cst_10 [1] : vector<1x4x2x128xf32> to vector<1x2x128xf32>
    %16 = vector.shape_cast %15 : vector<1x2x128xf32> to vector<1x1x2x128xf32>
    %17 = math.exp %13 : vector<1x4x2x128xf32>
    %cst_11 = arith.constant dense<0.000000e+00> : vector<1x2x128xf32>
    %18 = vector.multi_reduction <add>, %17, %cst_11 [1] : vector<1x4x2x128xf32> to vector<1x2x128xf32>
    %19 = vector.shape_cast %18 : vector<1x2x128xf32> to vector<1x1x2x128xf32>
    %20 = arith.subf %13, %9 : vector<1x4x2x128xf32>
    %21 = arith.mulf %17, %20 : vector<1x4x2x128xf32>
    %cst_12 = arith.constant dense<0.000000e+00> : vector<1x2x128xf32>
    %22 = vector.multi_reduction <add>, %21, %cst_12 [1] : vector<1x4x2x128xf32> to vector<1x2x128xf32>
    %23 = vector.shape_cast %22 : vector<1x2x128xf32> to vector<1x1x2x128xf32>
    %24 = tpu.reciprocal %19 {approx = true} : vector<1x1x2x128xf32> -> vector<1x1x2x128xf32>
    %25 = arith.mulf %24, %23 : vector<1x1x2x128xf32>
    %26 = arith.mulf %19, %24 : vector<1x1x2x128xf32>
    %27 = math.log %16 : vector<1x1x2x128xf32>
    %28 = math.log %19 : vector<1x1x2x128xf32>
    %29 = arith.subf %27, %28 : vector<1x1x2x128xf32>
    %30 = arith.mulf %26, %29 : vector<1x1x2x128xf32>
    %31 = arith.addf %25, %30 : vector<1x1x2x128xf32>
    %32 = vector.shape_cast %31 : vector<1x1x2x128xf32> to vector<1x1x1x2x128xf32>
    %cst_13 = arith.constant dense<0.000000e+00> : vector<1xf32>
    %33 = vector.multi_reduction <add>, %32, %cst_13 [1, 2, 3, 4] : vector<1x1x1x2x128xf32> to vector<1xf32>
    %34 = vector.shape_cast %33 : vector<1xf32> to vector<1x1x1x1x1xf32>
    %35 = vector.extract %34[0, 0, 0, 0, 0] : f32 from vector<1x1x1x1x1xf32>
    %36 = vector.broadcast %35 : f32 to vector<1x1x8x128xf32>
    %c0_14 = arith.constant 0 : index
    %c0_15 = arith.constant 0 : index
    %c0_16 = arith.constant 0 : index
    %c0_17 = arith.constant 0 : index
    %37 = vector.load %arg4[%c0_14, %c0_15, %c0_16, %c0_17] : memref<1x1x8x128xf32, #tpu.memory_space<vmem>>, vector<1x1x8x128xf32>
    tpu.vector_store %arg4[%c0_14, %c0_15, %c0_16, %c0_17], %36 {strides = array<i32>} : memref<1x1x8x128xf32, #tpu.memory_space<vmem>>, vector<1x1x8x128xf32>,
    return
  }
  func.func @transform_0(%arg0: i32, %arg1: i32) -> (i32, i32, i32, i32) {
    %c0_i32 = arith.constant 0 : i32
    %c0_i32_0 = arith.constant 0 : i32
    %c0_i32_1 = arith.constant 0 : i32
    return %arg0, %c0_i32, %arg1, %c0_i32_0 : i32, i32, i32, i32
  }
  func.func @transform_1(%arg0: i32, %arg1: i32) -> (i32, i32, i32, i32) {
    %c0_i32 = arith.constant 0 : i32
    %c0_i32_0 = arith.constant 0 : i32
    %c0_i32_1 = arith.constant 0 : i32
    return %arg0, %c0_i32, %arg1, %c0_i32_0 : i32, i32, i32, i32
  }
  func.func @transform_2(%arg0: i32, %arg1: i32) -> (i32, i32, i32, i32) {
    %c0_i32 = arith.constant 0 : i32
    %c0_i32_0 = arith.constant 0 : i32
    %c0_i32_1 = arith.constant 0 : i32
    return %arg0, %arg1, %c0_i32, %c0_i32_0 : i32, i32, i32, i32
  }
}

</mosaic_0001>

<bundles_post_ra>
// kernel: tpu_custom_call.1
= control target key start
LH: loop header
LB: loop body
LE: loop exit
PB: predicated region body
PF: predicated region fallthrough
CT: control target
= control target key end

     0   :  { %7 = vsyncpa [#allocation3], 0  ;;  %s923_s0 = inlined_call_operand.hbm [shape: f32[2,4,2,128], index: 0, kind: input, shape index: {}]   ;;  %s924_s1 = inlined_call_operand.hbm [shape: f32[2,4,2,128], index: 1, kind: input, shape index: {}]   ;;  %s925_s2 = inlined_call_operand.hbm [shape: f32[2,1,8,128], index: 2, kind: output, shape index: {}]  }
   0x1   :  { %9 = vsyncpa [#allocation3 + $0x1], 0 }
   0x2   :  { %10 = vsyncpa [#allocation6], 0 }
   0x3   :  { %12 = vsyncpa [#allocation6 + $0x1], 0 }
   0x4   :  { %13 = vsyncpa [#allocation4], 0 }
   0x5   :  { %15 = vsyncpa [#allocation4 + $0x1], 0  ;;  %s724_s9 = smov 0   ;;  %s726_s10 = smov 0  }
   0x6   :  { %s728_s11 = smov 0   ;;  %s730_s12 = smov 0  }
   0x7   :  { %s732_s13 = smov 0   ;;  %s734_s14 = smov 0  }
   0x8 LB: > { %s449_s15 = sadd.s32 4294967295, %s702_s14   ;;  %s450_s16 = sadd.s32 4294967294, %s702_s14   ;;  %s702_s14 = sphi %s734_s14, %s21_s14   ;;  %s698_s13 = sphi %s732_s13, %s937_s13   ;;  %s694_s12 = sphi %s730_s12, %s936_s12   ;;  %s690_s11 = sphi %s728_s11, %s935_s11   ;;  %s686_s10 = sphi %s726_s10, %s934_s10   ;;  %s682_s9 = sphi %s724_s9, %s933_s9  }
   0x9   : > { %s33_s17 = sadd.s32 1, %s698_s13  ;;  %s42_s18 = sadd.s32 1, %s690_s11 }
   0xa   : > { %p35_p0 = scmp.ge.s32.totalorder %s33_s17, 2  ;;  %p49_p1 = scmp.ne.s32.totalorder %s690_s11, %s686_s10 }
   0xb   : > { %p50_p2 = scmp.eq.s32.totalorder %s702_s14, 0  ;;  %p55_p3 = scmp.ne.s32.totalorder %s686_s10, %s682_s9 }
   0xc   : > { %s939_s17 = smov (%p35_p0, %s33_s17), 0  ;;  %p56_p5 = scmp.eq.s32.totalorder %s449_s15, 0 }
   0xd   : > { %p765_p4 = por %p50_p2, %p49_p1  ;;  %s37_s20 = ssub.s32 %s698_s13, %s939_s17 }
   0xe   : > { %p109_p6 = scmp.eq.s32.totalorder %s449_s15, 1  ;;  %p40_p7 = scmp.eq.s32.totalorder %s37_s20, 0 }
   0xf   : > { %p771_p8 = por %p56_p5, %p55_p3  ;;  %p115_p10 = scmp.eq.s32.totalorder %s450_s16, 1 }
  0x10   : > { %p775_p9 = por %p109_p6, %p49_p1  ;;  %p488_p13 = scmp.lt.s32.totalorder %s702_s14, 2 }
  0x11   : > { %s780_s23 = scalar_select %p40_p7, %s690_s11, %s42_s18  }
  0x12   : > { %p782_p11 = por %p115_p10, %p55_p3  ;;  %s789_s25 = sand.u32 1, %s690_s11  }
  0x13   : > { %s453_s26 = sshll.u32 %s789_s25, 3  ;;  %s467_s27 = sshll.u32 %s698_s13, 7 }
  0x14   : > { %s146_s30 = scalar_lea.hbm %s923_s0, %s467_s27  ;;  %s139_s3 = scalar_lea.vmem [#allocation2], %s453_s26 }
  0x15   : > { %s147_s4 = sshll.u32 %s139_s3, 4  ;;  %p802_p0 = pnand %p488_p13, %p765_p4  ;;  %s148_s4 = int_to_ptr.vmem [resolvable:$true] %s147_s4 }
  0x16   : > { %p459_p1 = scmp.ge.s32.totalorder %s702_s14, 1  ;;  %s136_s6 = scalar_lea.sflag [#allocation3], %s789_s25 }
  0x17   : > { %p564_p2 = pneg %p802_p0  ;;  %s575_s7 = scalar_lea.vmem %s148_s4, 128 }
  0x18   : > { %p576_p3 = scmp.ne.s32.totalorder %s148_s4, %s575_s7  ;;  %s704_s8 = smov [#allocation2]  }
  0x19   : > { %s580_s15 = sshll.u32 %s704_s8, 4  ;;  %s581_s15 = int_to_ptr.vmem [resolvable:$false] %s580_s15 }
  0x1a   : > { %p578_p5 = pnand %p576_p3, %p564_p2  ;;  %s582_s16 = scalar_lea.vmem %s581_s15, 256 }
  0x1b   : > { %p583_p4 = scmp.lt.s32.totalorder %s148_s4, %s581_s15  ;;  %p584_p7 = scmp.lt.s32.totalorder %s582_s16, %s575_s7 }
  0x1c   : > { %p579_p6 = pneg %p578_p5 }
  0x1d   : > { %p585_p10 = por %p584_p7, %p583_p4 }
  0x1f   : > { %p586_p13 = pnand %p585_p10, %p579_p6 }
  0x21   : > { %589 = shalt.err (!%p586_p13)
}
  0x22   : > { %s705_s18 = smov 32   ;;  %s706_s19 = smov 2  }
  0x23   : > { %480 = dma.hbm_to_vmem [thread:$0]  (!%p802_p0), %s146_s30, 128, %s148_s4, %s136_s6, %s705_s18, %s705_s18, %s706_s19  }
  0x24   : > { %p177_p3 = scmp.lt.s32.totalorder %s702_s14, 3  ;;  %s168_s29 = scalar_lea.hbm %s924_s1, %s467_s27 }
  0x25   : > { %s161_s7 = scalar_lea.vmem [#allocation5], %s453_s26  ;;  %s158_s15 = scalar_lea.sflag [#allocation6], %s789_s25 }
  0x26   : > { %p823_p5 = pnand %p459_p1, %p177_p3  ;;  %s169_s8 = sshll.u32 %s161_s7, 4  ;;  %s170_s8 = int_to_ptr.vmem [resolvable:$true] %s169_s8 }
  0x27   : > { %s603_s16 = scalar_lea.vmem %s170_s8, 128  ;;  %s707_s30 = smov [#allocation5]  }
  0x28   : > { %p604_p6 = scmp.ne.s32.totalorder %s170_s8, %s603_s16  ;;  %s608_s4 = sshll.u32 %s707_s30, 4  ;;  %s609_s4 = int_to_ptr.vmem [resolvable:$false] %s608_s4 }
  0x29   : > { %s610_s27 = scalar_lea.vmem %s609_s4, 256  ;;  %p611_p10 = scmp.lt.s32.totalorder %s170_s8, %s609_s4 }
  0x2a   : > { %p606_p4 = pnand %p604_p6, %p564_p2  ;;  %p612_p1 = scmp.lt.s32.totalorder %s610_s27, %s603_s16 }
  0x2c   : > { %p607_p7 = pneg %p606_p4  ;;  %p613_p13 = por %p612_p1, %p611_p10 }
  0x2e   : > { %p614_p3 = pnand %p613_p13, %p607_p7 }
  0x30   : > { %617 = shalt.err (!%p614_p3)
}
  0x31   : > { %483 = dma.hbm_to_vmem [thread:$0]  (!%p802_p0), %s168_s29, 128, %s170_s8, %s158_s15, %s705_s18, %s705_s18, %s706_s19  }
  0x32   : > { %181 = sbr.rel (%p823_p5) target bundleno = 336 (0x150), region = 28  ;;  %s838_s25 = sand.u32 (!%p823_p5), 1, %s686_s10  }
  0x33   : > { %s841_s26 = sshll.u32 (!%p823_p5), %s838_s25, 3  ;;  %s184_s6 = scalar_lea.sflag (!%p823_p5), [#allocation3], %s838_s25 }
  0x34   : > { %s187_s20 = scalar_lea.vmem (!%p823_p5), [#allocation2], %s841_s26 }
  0x37   : > { %669 = dma.done.wait (%p771_p8), %s184_s6, 128  }
  0x38   : > { %671 = vsyncadd (%p771_p8), %s184_s6, 4294967168  ;;  %s193_s5 = scalar_lea.sflag [#allocation6], %s838_s25  ;;  %s196_s18 = scalar_lea.vmem [#allocation5], %s841_s26 }
  0x39   : > { %673 = dma.done.wait (%p771_p8), %s193_s5, 128  }
  0x3a   : > { %675 = vsyncadd (%p771_p8), %s193_s5, 4294967168  ;;  %v222_v0 = vld [vmem:[%s187_s20] sm:$0x3]  ;;  %v223_v1 = vld [vmem:[%s187_s20 + $0x2] sm:$0x3]  ;;  %vm238_vm0 = vcmask 1041408  }
  0x3b   : > { %v224_v2 = vld [vmem:[%s187_s20 + $0x4] sm:$0x3]  ;;  %v225_v3 = vld [vmem:[%s187_s20 + $0x6] sm:$0x3]  ;;  %v226_v4 = vmul.f32 0.25, %v222_v0  ;;  %v227_v5 = vmul.f32 0.25, %v223_v1 }
  0x3c   : > { %v228_v6 = vmul.f32 0.25, %v224_v2  ;;  %v229_v7 = vmul.f32 0.25, %v225_v3  ;;  %v230_v8 = vld [vmem:[%s196_s18] sm:$0x3]  ;;  %v231_v9 = vld [vmem:[%s196_s18 + $0x2] sm:$0x3] }
  0x3d   : > { %v232_v10 = vld [vmem:[%s196_s18 + $0x4] sm:$0x3]  ;;  %v233_v11 = vld [vmem:[%s196_s18 + $0x6] sm:$0x3]  ;;  %v234_v12 = vmul.f32 0.25, %v230_v8  ;;  %v235_v13 = vmul.f32 0.25, %v231_v9 }
  0x3e   : > { %v236_v14 = vmul.f32 0.25, %v232_v10  ;;  %v237_v15 = vmul.f32 0.25, %v233_v11  ;;  %v239_v16 = vsel %vm238_vm0, %v226_v4, -inf  ;;  %v240_v17 = vsel %vm238_vm0, %v227_v5, -inf  ;;  %s221_s21 = scalar_lea.vmem [#allocation7], %s841_s26  ;;  %s464_s28 = sshll.u32 %s694_s12, 7 }
  0x3f   : > { %v241_v18 = vsel %vm238_vm0, %v228_v6, -inf  ;;  %v242_v19 = vsel %vm238_vm0, %v229_v7, -inf  ;;  %v243_v20 = vmax.f32 %v239_v16, %v240_v17  ;;  %v250_v21 = vsel %vm238_vm0, %v234_v12, -inf  ;;  %s343_s19 = sshll.u32 %s221_s21, 4  ;;  %s341_s8 = scalar_lea.hbm %s925_s2, %s464_s28  ;;  %s878_s19 = int_to_ptr.vmem [resolvable:$true] %s343_s19 }
  0x40   : > { %v244_v22 = vmax.f32 %v241_v18, %v242_v19  ;;  %v251_v23 = vsel %vm238_vm0, %v235_v13, -inf  ;;  %v252_v24 = vsel %vm238_vm0, %v236_v14, -inf  ;;  %v253_v25 = vsel %vm238_vm0, %v237_v15, -inf  ;;  %s329_s15 = scalar_lea.sflag [#allocation4], %s838_s25  ;;  %s618_s16 = scalar_lea.vmem %s878_s19, 128 }
  0x41   : > { %v254_v26 = vmax.f32 %v250_v21, %v251_v23  ;;  %v255_v27 = vmax.f32 %v252_v24, %v253_v25  ;;  %p619_p8 = scmp.ne.s32.totalorder %s878_s19, %s618_s16  ;;  %s708_s30 = smov [#allocation7]  }
  0x42   : > { %v245_v28 = vmax.f32 %v243_v20, %v244_v22  ;;  %s622_s12 = sshll.u32 %s708_s30, 4  ;;  %s623_s12 = int_to_ptr.vmem [resolvable:$false] %s622_s12 }
  0x43   : > { %v256_v29 = vmax.f32 %v254_v26, %v255_v27  ;;  %p620_p0 = pnand %p619_p8, %p775_p9  ;;  %s624_s4 = scalar_lea.vmem %s623_s12, 256 }
  0x44   : > { %v246_v30 = vsub.f32 %v226_v4, %v245_v28  ;;  %v247_v31 = vsub.f32 %v227_v5, %v245_v28  ;;  %v248_v32 = vsub.f32 %v228_v6, %v245_v28  ;;  %v249_v33 = vsub.f32 %v229_v7, %v245_v28  ;;  %p625_p5 = scmp.lt.s32.totalorder %s878_s19, %s623_s12  ;;  %p626_p6 = scmp.lt.s32.totalorder %s624_s4, %s618_s16 }
  0x45   : > { %v257_v34 = vsub.f32 %v234_v12, %v256_v29  ;;  %v258_v35 = vsub.f32 %v235_v13, %v256_v29  ;;  %v259_v36 = vsub.f32 %v236_v14, %v256_v29  ;;  %v260_v40 = vsub.f32 %v237_v15, %v256_v29  ;;  %p621_p2 = pneg %p620_p0 }
  0x46   : > { %v261_v37 = vmul.f32 1.442695, %v246_v30  ;;  %v263_v38 = vmul.f32 1.442695, %v247_v31  ;;  %v265_v39 = vmul.f32 1.442695, %v248_v32  ;;  %p627_p4 = por %p626_p6, %p625_p5 }
  0x47   : > { %v267_v41 = vmul.f32 1.442695, %v249_v33  ;;  %v276_v42 = vmul.f32 1.442695, %v257_v34  ;;  %v278_v43 = vmul.f32 1.442695, %v258_v35  ;;  %v291_v61 = vsub.f32 %v257_v34, %v246_v30 }
  0x48   : > { %540 = vpow2.f32 %v261_v37  ;;  %v280_v44 = vmul.f32 1.442695, %v259_v36  ;;  %v282_v45 = vmul.f32 1.442695, %v260_v40  ;;  %v292_v2 = vsub.f32 %v258_v35, %v247_v31  ;;  %p628_p7 = pnand %p627_p4, %p621_p2 }
  0x49   : > { %542 = vpow2.f32 %v263_v38  ;;  %v293_v6 = vsub.f32 %v259_v36, %v248_v32  ;;  %v294_v9 = vsub.f32 %v260_v40, %v249_v33 }
  0x4a   : > { %544 = vpow2.f32 %v265_v39 }
  0x4b   : > { %546 = vpow2.f32 %v267_v41 }
  0x4c   : > { %548 = vpow2.f32 %v276_v42 }
  0x4d   : > { %550 = vpow2.f32 %v278_v43 }
  0x4e   : > { %552 = vpow2.f32 %v280_v44 }
  0x4f   : > { %554 = vpow2.f32 %v282_v45 }
  0x55   : > { %v541_v46 = vpop.eup %540 }
  0x56   : > { %v543_v47 = vpop.eup %542  ;;  %v269_v48 = vsel %vm238_vm0, %v541_v46, 0.0 }
  0x57   : > { %v545_v49 = vpop.eup %544  ;;  %v270_v50 = vsel %vm238_vm0, %v543_v47, 0.0 }
  0x58   : > { %v547_v51 = vpop.eup %546  ;;  %v271_v52 = vadd.f32 %v270_v50, %v269_v48  ;;  %v272_v53 = vsel %vm238_vm0, %v545_v49, 0.0 }
  0x59   : > { %v549_v54 = vpop.eup %548  ;;  %v274_v55 = vsel %vm238_vm0, %v547_v51, 0.0 }
  0x5a   : > { %v551_v56 = vpop.eup %550  ;;  %v273_v57 = vadd.f32 %v272_v53, %v271_v52  ;;  %v284_v58 = vsel %vm238_vm0, %v549_v54, 0.0  ;;  %v295_v7 = vmul.f32 %v549_v54, %v291_v61 }
  0x5b   : > { %v553_v59 = vpop.eup %552  ;;  %v285_v60 = vsel %vm238_vm0, %v551_v56, 0.0  ;;  %v296_v8 = vmul.f32 %v551_v56, %v292_v2 }
  0x5c   : > { %v555_v62 = vpop.eup %554  ;;  %v275_v63 = vadd.f32 %v274_v55, %v273_v57  ;;  %v286_v0 = vadd.f32 %v285_v60, %v284_v58  ;;  %v287_v1 = vsel %vm238_vm0, %v553_v59, 0.0  ;;  %v297_v10 = vmul.f32 %v553_v59, %v293_v6 }
  0x5d   : > { %v289_v3 = vsel %vm238_vm0, %v555_v62, 0.0  ;;  %v299_v11 = vsel %vm238_vm0, %v295_v7, 0.0  ;;  %v300_v12 = vsel %vm238_vm0, %v296_v8, 0.0  ;;  %v298_v14 = vmul.f32 %v555_v62, %v294_v9 }
  0x5e   : > { %v288_v4 = vadd.f32 %v287_v1, %v286_v0  ;;  %556 = vlog2.f32 %v275_v63  ;;  %v301_v13 = vadd.f32 %v300_v12, %v299_v11  ;;  %v302_v15 = vsel %vm238_vm0, %v297_v10, 0.0 }
  0x5f   : > { %v304_v18 = vsel %vm238_vm0, %v298_v14, 0.0 }
  0x60   : > { %v290_v5 = vadd.f32 %v289_v3, %v288_v4  ;;  %v303_v16 = vadd.f32 %v302_v15, %v301_v13 }
  0x62   : > { %558 = vrcp.f32 %v290_v5  ;;  %v305_v20 = vadd.f32 %v304_v18, %v303_v16 }
  0x63   : > { %560 = vlog2.f32 %v290_v5 }
  0x6b   : > { %v557_v17 = vpop.eup %556 }
  0x6c   : > { %v310_v21 = vmul.f32 0.6931472, %v557_v17 }
  0x6f   : > { %v559_v19 = vpop.eup %558 }
  0x70   : > { %v561_v22 = vpop.eup %560  ;;  %v308_v23 = vmul.f32 %v559_v19, %v290_v5  ;;  %v307_v25 = vmul.f32 %v559_v19, %v305_v20 }
  0x71   : > { %v312_v24 = vmul.f32 0.6931472, %v561_v22 }
  0x73   : > { %v313_v26 = vsub.f32 %v310_v21, %v312_v24 }
  0x75   : > { %v314_v27 = vmul.f32 %v313_v26, %v308_v23 }
  0x77   : > { %v315_v28 = vadd.f32 %v314_v27, %v307_v25 }
  0x79   : > { %v316_v29 = vsel %vm238_vm0, %v315_v28, 0.0 }
  0x7a   : > { %317 = vadd.xlane.f32.xlu0 %v316_v29 }
 0x103   : > { %v318_v30 = vpop.xlane.xlu0 %317 }
 0x104   : > { %v319_v31 = vrot.slane %v318_v30, 4 }
 0x106   : > { %v320_v32 = vadd.f32 %v319_v31, %v318_v30 }
 0x108   : > { %v321_v33 = vrot.slane %v320_v32, 2 }
 0x10a   : > { %v322_v34 = vadd.f32 %v321_v33, %v320_v32 }
 0x10c   : > { %v323_v35 = vrot.slane %v322_v34, 1 }
 0x10e   : > { %v324_v36 = vadd.f32 %v323_v35, %v322_v34 }
 0x110   : > { %469 = vpush %v324_v36 }
 0x141   : > { %s470_s29 = spop %469 }
 0x142   : > { %v326_v37 = vstv %s470_s29 }
 0x143   : > { %327 = vst [vmem:[%s221_s21] sm:$0xff] %v326_v37 }
 0x144   : > { %631 = shalt.err (!%p628_p7)
}
 0x145   : > { %s632_s27 = scalar_lea.hbm %s341_s8, 128  ;;  %s636_s6 = scalar_lea.hbm %s925_s2, 256 }
 0x146   : > { %p633_p10 = scmp.ne.s32.totalorder %s341_s8, %s632_s27  ;;  %p637_p3 = scmp.lt.s32.totalorder %s341_s8, %s925_s2 }
 0x147   : > { %p638_p8 = scmp.lt.s32.totalorder %s636_s6, %s632_s27 }
 0x148   : > { %p634_p1 = pnand %p633_p10, %p775_p9 }
 0x149   : > { %p639_p0 = por %p638_p8, %p637_p3 }
 0x14a   : > { %p635_p13 = pneg %p634_p1 }
 0x14c   : > { %p640_p12 = pnand %p639_p0, %p635_p13 }
 0x14e   : > { %643 = shalt.err (!%p640_p12)
}
 0x14f   : > { %475 = dma.vmem_to_hbm [thread:$0]  (%p775_p9), %s878_s19, 128, %s341_s8, %s329_s15  }
 0x150 PF: > { %s355_s18 = sand.u32 1, %s682_s9   ;;  %p932_p2 = scmp.ge.s32.totalorder %s702_s14, 2 }
 0x151   : > { %s356_s21 = scalar_lea.sflag [#allocation4], %s355_s18 }
 0x152   : > { %p485_p5 = pnand %p932_p2, %p782_p11 }
 0x154   : > { %p486_p6 = pneg %p485_p5 }
 0x156   : > { %677 = dma.done.wait (%p486_p6), %s356_s21, 128  }
 0x157   : > { %679 = vsyncadd (%p486_p6), %s356_s21, 4294967168  ;;  %s21_s14 = sadd.s32 1, %s702_s14   ;;  %s933_s9 = smov %s686_s10 }
 0x158   : > { %p18_p4 = scmp.ge.s32.totalorder %s21_s14, 4   ;;  %s934_s10 = smov %s690_s11 }
 0x159   : > { %s935_s11 = smov %s780_s23  ;;  %s936_s12 = smov %s698_s13 }
 0x15a   : > { %s937_s13 = smov %s939_s17  ;;  %20 = sbr.rel (!%p18_p4) target bundleno = 8 (0x8), region = 86 }
 0x15f   :  { %361 = vsyncpa [#allocation3], 1 }
 0x160   :  { %363 = vsyncpa [#allocation3 + $0x1], 1 }
 0x161   :  { %364 = vsyncpa [#allocation6], 1 }
 0x162   :  { %366 = vsyncpa [#allocation6 + $0x1], 1 }
 0x163   :  { %367 = vsyncpa [#allocation4], 1 }
 0x164   :  { %369 = vsyncpa [#allocation4 + $0x1], 1 }

</bundles_post_ra>
